<compile_context>
chip_gen: v6e
topology: v6e:2x2x1
jax: 0.10.0
libtpu: 0.0.40
codegen_flags: <defaults>
</compile_context>

<pallas_src>
import jax
import jax.numpy as jnp
from jax.experimental import pallas as pl
from jax.experimental.pallas import tpu as pltpu


def _round_up(x, m):
    return ((x + m - 1) // m) * m


# ----------------------------------------------------------------------------
# Kernel
# ----------------------------------------------------------------------------
def _ensemble_fused_kernel(x_ref,      # VMEM [TB, D_pad]   bf16
                           w1_ref,     # VMEM [D_pad, TK]   bf16  (stacked W1 slice)
                           b1_ref,     # VMEM [1, TK]       f32   (stacked b1 slice)
                           scale_ref,  # VMEM [1, TK]       f32   (ensemble weights, repeated over H)
                           w2_ref,     # VMEM [TK, O_pad]   bf16  (stacked W2 slice, UNscaled)
                           b2_ref,     # VMEM [1, O_pad]    f32   (wts-weighted sum of b2)
                           o_ref):     # VMEM [TB, O_pad]   f32   (accumulator / output)
    k = pl.program_id(1)

    # Initialize the output block with the (already wts-weighted) b2 bias.
    @pl.when(k == 0)
    def _():
        o_ref[...] = jnp.broadcast_to(b2_ref[...], o_ref.shape)

    # h_k = tanh(x @ W1_all[:, k_tile] + b1_all[k_tile])   (f32 bias add + tanh)
    h = jnp.tanh(
        jnp.dot(x_ref[...], w1_ref[...], preferred_element_type=jnp.float32)
        + b1_ref[...]
    )
    # Apply the ensemble weights in f32 (per hidden column of the fused K axis).
    h = h * scale_ref[...]

    # Accumulate this K tile's contribution into the VMEM-resident f32 output.
    o_ref[...] += jnp.dot(h.astype(w2_ref.dtype), w2_ref[...],
                          preferred_element_type=jnp.float32)


# ----------------------------------------------------------------------------
# One-time parameter preparation (hoisted out of the per-call path)
# ----------------------------------------------------------------------------
def _choose_k_tile(K, D_pad, O_pad, weight_budget_bytes=24 * 1024 * 1024):
    """Pick TK (multiple of 128) minimizing padded-K waste under a VMEM budget."""
    K_128 = _round_up(max(K, 1), 128)
    # Double-buffered bf16 W1 + W2 slices: 2 (bufs) * 2 (bytes) * TK * (D_pad + O_pad)
    tk_cap = weight_budget_bytes // (4 * (D_pad + O_pad))
    tk_cap = max(128, min(2048, (tk_cap // 128) * 128, K_128))
    best_tk, best_waste = 128, None
    for tk in range(128, tk_cap + 1, 128):
        waste = _round_up(K_128, tk) - K_128
        if (best_waste is None or waste < best_waste
                or (waste == best_waste and tk > best_tk)):
            best_tk, best_waste = tk, waste
    return best_tk, _round_up(K_128, best_tk)


def prepare_ensemble_params(w1, b1, w2, b2, *, compute_dtype=jnp.bfloat16):
    """Fold the ensemble axis into K and pad once.  Call this ONCE per parameter set.

    w1: [N, D, H], b1: [N, 1, H], w2: [N, H, O], b2: [N, 1, O]
    Returns (params: dict of jnp arrays, cfg: dict of python ints).
    """
    N, D, H = w1.shape
    O = w2.shape[2]
    K = N * H

    # Lane/sublane padding: pad D only to the bf16 sublane multiple (16) when
    # small, O only when >= 128; the fused K axis is padded to a 128 multiple.
    D_pad = _round_up(D, 128) if D > 128 else _round_up(D, 16)
    O_pad = _round_up(O, 128) if O >= 128 else O
    TK, K_pad = _choose_k_tile(K, D_pad, O_pad)

    # Fold ensemble axis into K (column/row index = n*H + h).
    w1_all = jnp.transpose(w1, (1, 0, 2)).reshape(D, K)   # [D, K]
    b1_all = b1.reshape(1, K)                              # [1, K]
    w2_all = w2.reshape(K, O)                              # [K, O]  (NOT wts-scaled)

    # Zero-pad to aligned shapes (exact: tanh(0)=0 meets zero scale / zero W2 rows).
    w1_p = jnp.zeros((D_pad, K_pad), compute_dtype).at[:D, :K].set(w1_all.astype(compute_dtype))
    b1_p = jnp.zeros((1, K_pad), jnp.float32).at[:, :K].set(b1_all.astype(jnp.float32))
    w2_p = jnp.zeros((K_pad, O_pad), compute_dtype).at[:K, :O].set(w2_all.astype(compute_dtype))
    b2_flat = b2.reshape(N, O).astype(jnp.float32)         # weighted per call (tiny)

    params = {"w1_p": w1_p, "b1_p": b1_p, "w2_p": w2_p, "b2": b2_flat}
    cfg = {"N": N, "D": D, "H": H, "O": O, "K": K,
           "D_pad": D_pad, "O_pad": O_pad, "K_pad": K_pad, "TK": TK}
    return params, cfg


# ----------------------------------------------------------------------------
# Per-call forward
# ----------------------------------------------------------------------------
def function_ensemble_forward(x, wts, params, cfg, *, compute_dtype=jnp.bfloat16):
    """y = sum_i wts[i] * (tanh(x @ w1[i] + b1[i]) @ w2[i] + b2[i]).   x: [B, D]."""
    D, H, O, K = cfg["D"], cfg["H"], cfg["O"], cfg["K"]
    D_pad, O_pad, K_pad, TK = cfg["D_pad"], cfg["O_pad"], cfg["K_pad"], cfg["TK"]
    B = x.shape[0]

    # Batch tiling: single full tile when B <= 256, else 128/256 minimizing waste.
    if B >= 256:
        TB = 256 if (_round_up(B, 256) - B) <= (_round_up(B, 128) - B) else 128
    else:
        TB = _round_up(B, 8)
    B_pad = _round_up(B, TB)

    # Per-call (cheap) prep: pad x, build the f32 ensemble-scale vector and the
    # wts-weighted b2.  All O(B*D + N*O + K) — negligible vs. the weight stream.
    x_p = jnp.zeros((B_pad, D_pad), compute_dtype).at[:B, :D].set(x.astype(compute_dtype))
    wts_f = wts.astype(jnp.float32)
    scale_p = jnp.zeros((1, K_pad), jnp.float32).at[0, :K].set(jnp.repeat(wts_f, H))
    b2_w = jnp.einsum("n,no->o", wts_f, params["b2"])
    b2_p = jnp.zeros((1, O_pad), jnp.float32).at[0, :O].set(b2_w)

    n_btiles = B_pad // TB
    n_ktiles = K_pad // TK
    grid = (n_btiles, n_ktiles)

    # Advisory cost estimate so XLA schedules surrounding ops sensibly.
    flops = 2 * B_pad * K_pad * (D_pad + O_pad)
    transcendentals = B_pad * K_pad
    weight_stream_bytes = (D_pad * K_pad * 2 + K_pad * O_pad * 2
                           + 2 * K_pad * 4 + O_pad * 4)
    bytes_accessed = (B_pad * D_pad * 2 + B_pad * O_pad * 4
                      + n_btiles * weight_stream_bytes)
    cost = pl.CostEstimate(flops=flops, transcendentals=transcendentals,
                           bytes_accessed=bytes_accessed)

    grid_spec = pltpu.PrefetchScalarGridSpec(
        num_scalar_prefetch=0,
        grid=grid,
        in_specs=[
            pl.BlockSpec((TB, D_pad), lambda i, k: (i, 0)),   # x batch tile
            pl.BlockSpec((D_pad, TK), lambda i, k: (0, k)),   # W1_all K slice
            pl.BlockSpec((1, TK),     lambda i, k: (0, k)),   # b1_all K slice
            pl.BlockSpec((1, TK),     lambda i, k: (0, k)),   # ensemble-weight scale slice
            pl.BlockSpec((TK, O_pad), lambda i, k: (k, 0)),   # W2_all K slice
            pl.BlockSpec((1, O_pad),  lambda i, k: (0, 0)),   # wts-weighted b2
        ],
        out_specs=pl.BlockSpec((TB, O_pad), lambda i, k: (i, 0)),
    )

    out = pl.pallas_call(
        _ensemble_fused_kernel,
        out_shape=jax.ShapeDtypeStruct((B_pad, O_pad), jnp.float32),
        grid_spec=grid_spec,
        compiler_params=pltpu.CompilerParams(
            dimension_semantics=("parallel", "arbitrary"),   # batch parallel, K reduction
            vmem_limit_bytes=48 * 1024 * 1024,               # safe on v5e/v6e (128 MiB) and v7x (64 MiB)
        ),
        cost_estimate=cost,
    )(x_p, params["w1_p"], params["b1_p"], scale_p, params["w2_p"], b2_p)

    return out[:B, :O]


def make_ensemble_forward(w1, b1, w2, b2):
    """Prepare the fused/padded weights once and return a jitted forward(x, wts)."""
    if w1.shape[0] == 0:
        # Matches the PyTorch module: an empty ensemble returns 0.0
        return lambda x, wts: 0.0
    params, cfg = prepare_ensemble_params(w1, b1, w2, b2)

    @jax.jit
    def fwd(x, wts):
        return function_ensemble_forward(x, wts, params, cfg)

    return fwd


# ----------------------------------------------------------------------------
# Reference + demo
# ----------------------------------------------------------------------------
def _reference_forward(x, w1, b1, w2, b2, wts):
    """Pure-JAX f32 reference of the PyTorch forward (weighted sum of MLP outputs)."""
    outs = []
    for i in range(w1.shape[0]):
        h = jnp.tanh(x @ w1[i] + b1[i])
        outs.append(wts[i] * (h @ w2[i] + b2[i]))
    return jnp.sum(jnp.stack(outs), axis=0)


if __name__ == "__main__":
    # Small, deterministic example shapes.
    B, D, H, O, N = 8, 32, 32, 32, 4

    key = jax.random.PRNGKey(0)
    kx, k1, k2, k3, k4, k5 = jax.random.split(key, 6)

    x = jax.random.normal(kx, (B, D), dtype=jnp.float32)

    # Deterministic per-member parameters (synthetic, not a checkpoint).
    w1 = jax.random.normal(k1, (N, D, H), dtype=jnp.float32) * 0.1
    b1 = jax.random.normal(k2, (N, 1, H), dtype=jnp.float32) * 0.1
    w2 = jax.random.normal(k3, (N, H, O), dtype=jnp.float32) * 0.1
    b2 = jax.random.normal(k4, (N, 1, O), dtype=jnp.float32) * 0.1
    wts = jax.random.uniform(k5, (N,), dtype=jnp.float32)

    fwd = make_ensemble_forward(w1, b1, w2, b2)   # weight repacking done once here
    y = fwd(x, wts)
    y = jax.block_until_ready(y)

    y_ref = _reference_forward(x, w1, b1, w2, b2, wts)
    assert y.shape == (B, O)
    # bf16 matmul operands (f32 accumulation, f32 ensemble weights) -> loose tolerance.
    assert jnp.allclose(y, y_ref, atol=5e-2, rtol=5e-2), "mismatch vs reference"

    print("KERNEL_OK")
</pallas_src>

<mosaic_0001>
module attributes {stable_mosaic.version = 11 : i64} {
  func.func @_ensemble_fused_kernel(%arg0: i32, %arg1: i32, %arg2: memref<8x32xbf16, #tpu.memory_space<vmem>>, %arg3: memref<32x128xbf16, #tpu.memory_space<vmem>>, %arg4: memref<1x128xf32, #tpu.memory_space<vmem>>, %arg5: memref<1x128xf32, #tpu.memory_space<vmem>>, %arg6: memref<128x32xbf16, #tpu.memory_space<vmem>>, %arg7: memref<1x32xf32, #tpu.memory_space<vmem>>, %arg8: memref<8x32xf32, #tpu.memory_space<vmem>>) attributes {dimension_semantics = [#tpu.dimension_semantics<parallel>, #tpu.dimension_semantics<arbitrary>], iteration_bounds = array<i64: 1, 1>, scalar_prefetch = 0 : i64, scratch_operands = 0 : i64, tpu.core_type = #tpu.core_type<tc>, window_params = [{transform_indices = @transform_0, window_bounds = array<i64: 8, 32>}, {transform_indices = @transform_1, window_bounds = array<i64: 32, 128>}, {transform_indices = @transform_2, window_bounds = array<i64: 1, 128>}, {transform_indices = @transform_3, window_bounds = array<i64: 1, 128>}, {transform_indices = @transform_4, window_bounds = array<i64: 128, 32>}, {pipeline_mode = #tpu.pipeline_mode<synchronous>, transform_indices = @transform_5, window_bounds = array<i64: 1, 32>}, {transform_indices = @transform_6, window_bounds = array<i64: 8, 32>}]} {
    %c0_i32 = arith.constant 0 : i32
    %0 = arith.cmpi eq, %arg1, %c0_i32 : i32
    %1 = arith.extui %0 : i1 to i32
    %c0_i32_0 = arith.constant 0 : i32
    %2 = arith.cmpi ne, %1, %c0_i32_0 : i32
    scf.if %2 {
      %c0_15 = arith.constant 0 : index
      %c0_16 = arith.constant 0 : index
      %19 = vector.load %arg7[%c0_15, %c0_16] : memref<1x32xf32, #tpu.memory_space<vmem>>, vector<1x32xf32>
      %20 = vector.shape_cast %19 : vector<1x32xf32> to vector<1x32xf32>
      %21 = vector.broadcast %20 : vector<1x32xf32> to vector<8x32xf32>
      %c0_17 = arith.constant 0 : index
      %c0_18 = arith.constant 0 : index
      %22 = vector.load %arg8[%c0_17, %c0_18] : memref<8x32xf32, #tpu.memory_space<vmem>>, vector<8x32xf32>
      tpu.vector_store %arg8[%c0_17, %c0_18], %21 {strides = array<i32>} : memref<8x32xf32, #tpu.memory_space<vmem>>, vector<8x32xf32>,
    } else {
    }
    %c0 = arith.constant 0 : index
    %c0_1 = arith.constant 0 : index
    %3 = vector.load %arg2[%c0, %c0_1] : memref<8x32xbf16, #tpu.memory_space<vmem>>, vector<8x32xbf16>
    %c0_2 = arith.constant 0 : index
    %c0_3 = arith.constant 0 : index
    %4 = vector.load %arg3[%c0_2, %c0_3] : memref<32x128xbf16, #tpu.memory_space<vmem>>, vector<32x128xbf16>
    %cst = arith.constant dense<0.000000e+00> : vector<8x128xf32>
    %5 = tpu.matmul %3, %4, %cst {dimension_numbers = #tpu.dot_dimension_numbers<[1], [0], [0], [1], [0, 0, 1, 1], [], []>} : vector<8x32xbf16>, vector<32x128xbf16>, vector<8x128xf32> -> vector<8x128xf32>
    %c0_4 = arith.constant 0 : index
    %c0_5 = arith.constant 0 : index
    %6 = vector.load %arg4[%c0_4, %c0_5] : memref<1x128xf32, #tpu.memory_space<vmem>>, vector<1x128xf32>
    %7 = vector.broadcast %6 : vector<1x128xf32> to vector<8x128xf32>
    %8 = arith.addf %5, %7 : vector<8x128xf32>
    %9 = math.tanh %8 : vector<8x128xf32>
    %c0_6 = arith.constant 0 : index
    %c0_7 = arith.constant 0 : index
    %10 = vector.load %arg5[%c0_6, %c0_7] : memref<1x128xf32, #tpu.memory_space<vmem>>, vector<1x128xf32>
    %11 = vector.broadcast %10 : vector<1x128xf32> to vector<8x128xf32>
    %12 = arith.mulf %9, %11 : vector<8x128xf32>
    %c0_8 = arith.constant 0 : index
    %c0_9 = arith.constant 0 : index
    %13 = vector.load %arg8[%c0_8, %c0_9] : memref<8x32xf32, #tpu.memory_space<vmem>>, vector<8x32xf32>
    %14 = arith.truncf %12 : vector<8x128xf32> to vector<8x128xbf16>
    %c0_10 = arith.constant 0 : index
    %c0_11 = arith.constant 0 : index
    %15 = vector.load %arg6[%c0_10, %c0_11] : memref<128x32xbf16, #tpu.memory_space<vmem>>, vector<128x32xbf16>
    %cst_12 = arith.constant dense<0.000000e+00> : vector<8x32xf32>
    %16 = tpu.matmul %14, %15, %cst_12 {dimension_numbers = #tpu.dot_dimension_numbers<[1], [0], [0], [1], [0, 0, 1, 1], [], []>} : vector<8x128xbf16>, vector<128x32xbf16>, vector<8x32xf32> -> vector<8x32xf32>
    %17 = arith.addf %13, %16 : vector<8x32xf32>
    %c0_13 = arith.constant 0 : index
    %c0_14 = arith.constant 0 : index
    %18 = vector.load %arg8[%c0_13, %c0_14] : memref<8x32xf32, #tpu.memory_space<vmem>>, vector<8x32xf32>
    tpu.vector_store %arg8[%c0_13, %c0_14], %17 {strides = array<i32>} : memref<8x32xf32, #tpu.memory_space<vmem>>, vector<8x32xf32>,
    return
  }
  func.func @transform_0(%arg0: i32, %arg1: i32) -> (i32, i32) {
    %c0_i32 = arith.constant 0 : i32
    %c0_i32_0 = arith.constant 0 : i32
    return %arg0, %c0_i32 : i32, i32
  }
  func.func @transform_1(%arg0: i32, %arg1: i32) -> (i32, i32) {
    %c0_i32 = arith.constant 0 : i32
    %c0_i32_0 = arith.constant 0 : i32
    return %c0_i32, %arg1 : i32, i32
  }
  func.func @transform_2(%arg0: i32, %arg1: i32) -> (i32, i32) {
    %c0_i32 = arith.constant 0 : i32
    %c0_i32_0 = arith.constant 0 : i32
    return %c0_i32, %arg1 : i32, i32
  }
  func.func @transform_3(%arg0: i32, %arg1: i32) -> (i32, i32) {
    %c0_i32 = arith.constant 0 : i32
    %c0_i32_0 = arith.constant 0 : i32
    return %c0_i32, %arg1 : i32, i32
  }
  func.func @transform_4(%arg0: i32, %arg1: i32) -> (i32, i32) {
    %c0_i32 = arith.constant 0 : i32
    %c0_i32_0 = arith.constant 0 : i32
    return %arg1, %c0_i32 : i32, i32
  }
  func.func @transform_5(%arg0: i32, %arg1: i32) -> (i32, i32) {
    %c0_i32 = arith.constant 0 : i32
    %c0_i32_0 = arith.constant 0 : i32
    %c0_i32_1 = arith.constant 0 : i32
    return %c0_i32, %c0_i32_0 : i32, i32
  }
  func.func @transform_6(%arg0: i32, %arg1: i32) -> (i32, i32) {
    %c0_i32 = arith.constant 0 : i32
    %c0_i32_0 = arith.constant 0 : i32
    return %arg0, %c0_i32 : i32, i32
  }
}

</mosaic_0001>

<bundles_post_ra>
// kernel: fwd.1
= control target key start
LH: loop header
LB: loop body
LE: loop exit
PB: predicated region body
PF: predicated region fallthrough
CT: control target
= control target key end

     0   :  { %11 = vsyncpa [#allocation3], 0  ;;  %s436_s0 = inlined_call_operand.vmem [shape: bf16[8,32], index: 0, kind: input, shape index: {}]   ;;  %s437_s1 = inlined_call_operand.vmem [shape: bf16[32,128], index: 1, kind: input, shape index: {}]   ;;  %s438_s2 = inlined_call_operand.vmem [shape: f32[1,128], index: 2, kind: input, shape index: {}]   ;;  %s439_s3 = inlined_call_operand.vmem [shape: f32[1,128], index: 3, kind: input, shape index: {}]   ;;  %s440_s4 = inlined_call_operand.hbm [shape: bf16[128,32], index: 4, kind: input, shape index: {}]   ;;  %s441_s5 = inlined_call_operand.vmem [shape: f32[1,32], index: 5, kind: input, shape index: {}]   ;;  %s442_s6 = inlined_call_operand.hbm [shape: f32[8,32], index: 6, kind: output, shape index: {}]  }
   0x1   :  { %12 = vsyncpa [#allocation4], 0  ;;  %s368_s21 = smov [#allocation2]  }
   0x2   :  { %s26_s22 = sshll.u32 %s368_s21, 4  ;;  %s27_s22 = int_to_ptr.vmem [resolvable:$true] %s26_s22 }
   0x3   :  { %s332_s23 = scalar_lea.vmem %s27_s22, 1024  ;;  %p337_p1 = scmp.lt.s32.totalorder %s27_s22, %s27_s22 }
   0x4   :  { %p333_p0 = scmp.ne.s32.totalorder %s27_s22, %s332_s23  ;;  %p338_p2 = scmp.lt.s32.totalorder %s332_s23, %s332_s23 }
   0x6   :  { %p339_p3 = por %p338_p2, %p337_p1 }
   0x8   :  { %p340_p4 = pnand %p339_p3, %p333_p0 }
   0xa   :  { %343 = shalt.err (!%p340_p4)
}
   0xb   :  { %s369_s24 = smov 64   ;;  %s370_s25 = smov 4  }
   0xc   :  { %32 = dma.hbm_to_vmem [thread:$0]  %s440_s4, 1024, %s27_s22, [#allocation3], %s369_s24, %s369_s24, %s370_s25  }
   0xd   :  { %364 = dma.done.wait [#allocation3], 1024  }
   0xe   :  { %365 = vsyncadd [#allocation3], 4294966272  ;;  %v371_v0 = vmov 0.0   ;;  %vm372_vm0 = vmmov 0   ;;  %v312_v1 = vld [vmem:[%s437_s1 + $0x8] sm:$0xff]   ;;  %v313_v2 = vld [vmem:[%s437_s1] sm:$0xff]  }
   0xf   :  { %278 = vmatprep.subr.bf16.mxu0 %v371_v0  ;;  %282 = vmatprep.mubr.msk.bf16.mxu0 %vm372_vm0, %v371_v0  ;;  %v252_v3 = vld [vmem:[%s441_s5] ss:$0 sm:$0xff]  ;;  %vm50_vm1 = vcmask 261120   ;;  %v314_v4 = vld [vmem:[#allocation2 + $0x38] sm:$0xff]   ;;  %v315_v6 = vld [vmem:[#allocation2 + $0x30] sm:$0xff]   ;;  %s373_s12 = smov [#allocation5]  }
  0x10   :  { %286 = vmatprep.subr.bf16.mxu1 %v371_v0  ;;  %302 = vmatprep.mubr.msk.bf16.mxu1 %vm372_vm0, %v371_v0  ;;  %51 = vst.msk [vmem:[#allocation5] sm:$0xff] %vm50_vm1, %v252_v3  ;;  %v52_v5 = vld [vmem:[%s436_s0] sm:$0xf]  ;;  %v316_v7 = vld [vmem:[#allocation2 + $0x28] sm:$0xff]   ;;  %v318_v9 = vld [vmem:[#allocation2 + $0x18] sm:$0xff]   ;;  %s243_s13 = sshll.u32 %s373_s12, 4  ;;  %s244_s13 = int_to_ptr.vmem [resolvable:$true] %s243_s13 }
  0x11   :  { %279 = vmatpush3.bf16.msra.mxu0 %v312_v1  ;;  %287 = vmatpush3.bf16.msra.mxu1 %v314_v4  ;;  %v317_v8 = vld [vmem:[#allocation2 + $0x20] sm:$0xff]   ;;  %v319_v10 = vld [vmem:[#allocation2 + $0x10] sm:$0xff]   ;;  %v320_v11 = vld [vmem:[#allocation2 + $0x8] sm:$0xff]   ;;  %p349_p6 = scmp.lt.s32.totalorder %s244_s13, %s244_s13 }
  0x12   :  { %280 = vmatprep.subr.bf16.mxu0 %v371_v0  ;;  %288 = vmatprep.subr.bf16.mxu1 %v371_v0  ;;  %v321_v12 = vld [vmem:[#allocation2] sm:$0xff]  }
  0x13   :  { %v253_v13 = vld [vmem:[%s438_s2] ss:$0 sm:$0xff]  ;;  %s344_s2 = scalar_lea.vmem %s244_s13, 128 }
  0x14   :  { %v257_v19 = vld [vmem:[%s439_s3] ss:$0 sm:$0xff]  ;;  %p345_p5 = scmp.ne.s32.totalorder %s244_s13, %s344_s2  ;;  %p350_p7 = scmp.lt.s32.totalorder %s344_s2, %s344_s2 }
  0x15   :  { %281 = vmatpush3.bf16.msra.mxu0 %v313_v2  ;;  %289 = vmatpush3.bf16.msra.mxu1 %v315_v6 }
  0x16   :  { %290 = vmatprep.subr.bf16.mxu1 %v371_v0  ;;  %p351_p8 = por %p350_p7, %p349_p6 }
  0x17   :  { %v129_v23 = vld [vmem:[#allocation5] sm:$0xff] }
  0x18   :  { %283 = vmatmul.mubr.msk.bf16.vlgmr.msra.gmra.mxu0 %vm50_vm1, %v52_v5  ;;  %p352_p9 = pnand %p351_p8, %p345_p5 }
  0x19   :  { %291 = vmatpush3.bf16.msra.mxu1 %v316_v7 }
  0x1a   :  { %292 = vmatprep.subr.bf16.mxu1 %v371_v0 }
  0x1d   :  { %293 = vmatpush3.bf16.msra.mxu1 %v317_v8 }
  0x1e   :  { %294 = vmatprep.subr.bf16.mxu1 %v371_v0 }
  0x21   :  { %295 = vmatpush3.bf16.msra.mxu1 %v318_v9 }
  0x22   :  { %296 = vmatprep.subr.bf16.mxu1 %v371_v0 }
  0x25   :  { %297 = vmatpush3.bf16.msra.mxu1 %v319_v10 }
  0x26   :  { %298 = vmatprep.subr.bf16.mxu1 %v371_v0 }
  0x29   :  { %299 = vmatpush3.bf16.msra.mxu1 %v320_v11 }
  0x2a   :  { %300 = vmatprep.subr.bf16.mxu1 %v371_v0 }
  0x2d   :  { %301 = vmatpush3.bf16.msra.mxu1 %v321_v12 }
  0xd8   :  { %v114_v14 = vpop.f32.mrf.mxu0 }
  0xd9   :  { %v115_v15 = vadd.f32 %v253_v13, %v114_v14 }
  0xda   :  { %v284_v16 = vpop.f32.mrf.mxu0 }
  0xdb   :  { %322 = vtanh.f32 %v115_v15 }
  0xdc   :  { %v117_v17 = vpop.f32.mrf.mxu0 }
  0xde   :  { %v285_v18 = vpop.f32.mrf.mxu0 }
  0xe8   :  { %v323_v20 = vpop.eup %322 }
  0xe9   :  { %v128_v21 = vmul.f32 %v323_v20, %v257_v19 }
  0xeb   :  { %v130_v22 = vpack.c.bf16 %v128_v21, %v128_v21 }
  0xed   :  { %303 = vmatmul.mubr.bf16.vlgmr.msra.gmra.mxu1 %v130_v22 }
 0x1ad   :  { %v229_v24 = vpop.f32.mrf.mxu1 }
 0x1ae   :  { %v235_v25 = vadd.f32 %v229_v24, %v129_v23 }
 0x1af   :  { %v304_v26 = vpop.f32.mrf.mxu1 }
 0x1b0   :  { %236 = vst.msk [vmem:[#allocation5] sm:$0xff] %vm50_vm1, %v235_v25 }
 0x1b1   :  { %v232_v27 = vpop.f32.mrf.mxu1 }
 0x1b2   :  { %355 = shalt.err (!%p352_p9)
}
 0x1b3   :  { %246 = dma.vmem_to_hbm [thread:$0]  %s244_s13, 128, %s442_s6, [#allocation4]   ;;  %v305_v28 = vpop.f32.mrf.mxu1 }
 0x1b4   :  { %366 = dma.done.wait [#allocation4], 128  }
 0x1b5   :  { %367 = vsyncadd [#allocation4], 4294967168 }
 0x1b6   :  { %250 = vsyncpa [#allocation3], 1 }
 0x1b7   :  { %251 = vsyncpa [#allocation4], 1 }

</bundles_post_ra>
